<compile_context>
chip_gen: v7x
topology: tpu7x:2x2x1
jax: 0.10.0
libtpu: 0.0.40
codegen_flags: <defaults>
</compile_context>

<pallas_src>
import functools

import jax
import jax.numpy as jnp
from jax.experimental import pallas as pl
from jax.experimental.pallas import tpu as pltpu


# ---------------------------------------------------------------------------
# Fused decoder kernel: 4 autoregressive LSTM-cell steps + Linear head.
# ---------------------------------------------------------------------------
def _dbf_decoder_kernel(etc_ref, egph_ref, h0_ref, c0_ref,
                        w_y_ref, w_etc_ref, w_egph_ref, w_hh_ref,
                        b_ref, w_fc_ref, b_fc_ref,
                        y_ref, *, hidden, steps):
    f32 = jnp.float32
    n = etc_ref.shape[0]

    # Step-invariant gate contribution (ETC, EGPH, biases) — hoisted out of
    # the recurrence.  Shape (N, 4H); 4H = 128 lanes for H = 32.
    g_fix = (jnp.dot(etc_ref[...], w_etc_ref[...], preferred_element_type=f32)
             + jnp.dot(egph_ref[...], w_egph_ref[...], preferred_element_type=f32)
             + b_ref[...])

    h = h0_ref[...].astype(f32)                    # (N, H)
    c = c0_ref[...].astype(f32)                    # (N, H)
    y_prev = jnp.zeros((n, 2), f32)                # y0 = zeros(N, 1, 2)

    for t in range(steps):                         # statically unrolled (4)
        gates = (g_fix
                 + jnp.dot(y_prev, w_y_ref[...], preferred_element_type=f32)
                 + jnp.dot(h, w_hh_ref[...], preferred_element_type=f32))
        # PyTorch gate order: input, forget, cell(g), output.
        i_g = jax.nn.sigmoid(gates[:, 0 * hidden:1 * hidden])
        f_g = jax.nn.sigmoid(gates[:, 1 * hidden:2 * hidden])
        g_g = jnp.tanh(gates[:, 2 * hidden:3 * hidden])
        o_g = jax.nn.sigmoid(gates[:, 3 * hidden:4 * hidden])
        c = f_g * c + i_g * g_g
        h = o_g * jnp.tanh(c)
        # fc head; its output is fed back as the first 2 features next step.
        y_prev = (jnp.dot(h, w_fc_ref[...], preferred_element_type=f32)
                  + b_fc_ref[...])                 # (N, 2)
        y_ref[:, 2 * t:2 * (t + 1)] = y_prev.astype(y_ref.dtype)


def dbf_decoder_forward(etc, egph, h0, c0, params, steps=4):
    """etc: (N,1,d_etc), egph: (N,1,d_egph), h0/c0: (1,N,H)  ->  (N, steps, 2)."""
    N, _, d_etc = etc.shape
    d_egph = egph.shape[-1]
    H = params['w_hh'].shape[1]                    # PyTorch W_hh: (4H, H)

    # One-time weight re-layouts (plain JAX, outside the hot path):
    w_ih_t = params['w_ih'].T                      # (D, 4H), D = 2+d_etc+d_egph
    w_y = w_ih_t[:2]                               # (2, 4H)      — feedback y0
    w_etc = w_ih_t[2:2 + d_etc]                    # (d_etc, 4H)
    w_egph = w_ih_t[2 + d_etc:]                    # (d_egph, 4H)
    w_hh_t = params['w_hh'].T                      # (H, 4H)
    b = (params['b_ih'] + params['b_hh']).reshape(1, 4 * H)
    w_fc_t = params['w_fc'].T                      # (H, 2)
    b_fc = params['b_fc'].reshape(1, 2)

    vmem = pl.BlockSpec(memory_space=pltpu.MemorySpace.VMEM)
    out = pl.pallas_call(
        functools.partial(_dbf_decoder_kernel, hidden=H, steps=steps),
        out_shape=jax.ShapeDtypeStruct((N, 2 * steps), jnp.float32),
        in_specs=[vmem] * 11,
        out_specs=vmem,
    )(etc.reshape(N, d_etc), egph.reshape(N, d_egph),
      h0.reshape(N, H), c0.reshape(N, H),
      w_y, w_etc, w_egph, w_hh_t, b, w_fc_t, b_fc)
    return out.reshape(N, steps, 2)


# ---------------------------------------------------------------------------
# Deterministic parameter construction (PyTorch layouts).
# ---------------------------------------------------------------------------
def make_params(key, input_size, hidden, out_features=2):
    k1, k2, k3, k4, k5, k6 = jax.random.split(key, 6)
    return dict(
        w_ih=0.1 * jax.random.normal(k1, (4 * hidden, input_size), jnp.float32),
        w_hh=0.1 * jax.random.normal(k2, (4 * hidden, hidden), jnp.float32),
        b_ih=0.1 * jax.random.normal(k3, (4 * hidden,), jnp.float32),
        b_hh=0.1 * jax.random.normal(k4, (4 * hidden,), jnp.float32),
        w_fc=0.1 * jax.random.normal(k5, (out_features, hidden), jnp.float32),
        b_fc=0.1 * jax.random.normal(k6, (out_features,), jnp.float32),
    )


# ---------------------------------------------------------------------------
# Pure-JAX reference (mirrors the PyTorch forward, incl. the in-loop concat).
# ---------------------------------------------------------------------------
def _dbf_decoder_ref(etc, egph, h0, c0, params, steps=4):
    N = etc.shape[0]
    H = params['w_hh'].shape[1]
    h = h0.reshape(N, H)
    c = c0.reshape(N, H)
    y0 = jnp.zeros((N, 1, 2), jnp.float32)
    ys = []
    for _ in range(steps):
        x = jnp.concatenate([y0, etc, egph], axis=2)[:, 0, :]        # (N, D)
        gates = (x @ params['w_ih'].T + params['b_ih']
                 + h @ params['w_hh'].T + params['b_hh'])
        i_g = jax.nn.sigmoid(gates[:, :H])
        f_g = jax.nn.sigmoid(gates[:, H:2 * H])
        g_g = jnp.tanh(gates[:, 2 * H:3 * H])
        o_g = jax.nn.sigmoid(gates[:, 3 * H:])
        c = f_g * c + i_g * g_g
        h = o_g * jnp.tanh(c)
        out = h @ params['w_fc'].T + params['b_fc']                  # (N, 2)
        y0 = out[:, None, :]
        ys.append(y0)
    return jnp.concatenate(ys, axis=1)                               # (N, 4, 2)


if __name__ == "__main__":
    key = jax.random.PRNGKey(0)
    N, d_etc, d_egph, H = 2, 8, 6, 32          # input_size = 2 + 8 + 6 = 16, 4H = 128
    k_etc, k_egph, k_h, k_c, k_p = jax.random.split(key, 5)

    ETC = jax.random.normal(k_etc, (N, 1, d_etc), jnp.float32)
    EGPH = jax.random.normal(k_egph, (N, 1, d_egph), jnp.float32)
    h0 = jax.random.normal(k_h, (1, N, H), jnp.float32)
    c0 = jax.random.normal(k_c, (1, N, H), jnp.float32)
    params = make_params(k_p, input_size=2 + d_etc + d_egph, hidden=H)

    y = dbf_decoder_forward(ETC, EGPH, h0, c0, params)
    y = jax.block_until_ready(y)

    y_ref = _dbf_decoder_ref(ETC, EGPH, h0, c0, params)

    assert y.shape == (N, 4, 2), y.shape
    assert jnp.allclose(y, y_ref, atol=1e-5, rtol=1e-5), \
        float(jnp.max(jnp.abs(y - y_ref)))
    print("KERNEL_OK")
</pallas_src>

<mosaic_0001>
module attributes {stable_mosaic.version = 11 : i64} {
  func.func @_dbf_decoder_kernel(%arg0: memref<2x8xf32, #tpu.memory_space<vmem>>, %arg1: memref<2x6xf32, #tpu.memory_space<vmem>>, %arg2: memref<2x32xf32, #tpu.memory_space<vmem>>, %arg3: memref<2x32xf32, #tpu.memory_space<vmem>>, %arg4: memref<2x128xf32, #tpu.memory_space<vmem>>, %arg5: memref<8x128xf32, #tpu.memory_space<vmem>>, %arg6: memref<6x128xf32, #tpu.memory_space<vmem>>, %arg7: memref<32x128xf32, #tpu.memory_space<vmem>>, %arg8: memref<1x128xf32, #tpu.memory_space<vmem>>, %arg9: memref<32x2xf32, #tpu.memory_space<vmem>>, %arg10: memref<1x2xf32, #tpu.memory_space<vmem>>, %arg11: memref<2x8xf32, #tpu.memory_space<vmem>>) attributes {dimension_semantics = [], scalar_prefetch = 0 : i64, scratch_operands = 0 : i64, tpu.core_type = #tpu.core_type<tc>} {
    %c0 = arith.constant 0 : index
    %c0_0 = arith.constant 0 : index
    %0 = vector.load %arg0[%c0, %c0_0] : memref<2x8xf32, #tpu.memory_space<vmem>>, vector<2x8xf32>
    %c0_1 = arith.constant 0 : index
    %c0_2 = arith.constant 0 : index
    %1 = vector.load %arg5[%c0_1, %c0_2] : memref<8x128xf32, #tpu.memory_space<vmem>>, vector<8x128xf32>
    %cst = arith.constant dense<0.000000e+00> : vector<2x128xf32>
    %2 = tpu.matmul %0, %1, %cst {dimension_numbers = #tpu.dot_dimension_numbers<[1], [0], [0], [1], [0, 0, 1, 1], [], []>} : vector<2x8xf32>, vector<8x128xf32>, vector<2x128xf32> -> vector<2x128xf32>
    %c0_3 = arith.constant 0 : index
    %c0_4 = arith.constant 0 : index
    %3 = vector.load %arg1[%c0_3, %c0_4] : memref<2x6xf32, #tpu.memory_space<vmem>>, vector<2x6xf32>
    %c0_5 = arith.constant 0 : index
    %c0_6 = arith.constant 0 : index
    %4 = vector.load %arg6[%c0_5, %c0_6] : memref<6x128xf32, #tpu.memory_space<vmem>>, vector<6x128xf32>
    %cst_7 = arith.constant dense<0.000000e+00> : vector<2x128xf32>
    %5 = tpu.matmul %3, %4, %cst_7 {dimension_numbers = #tpu.dot_dimension_numbers<[1], [0], [0], [1], [0, 0, 1, 1], [], []>} : vector<2x6xf32>, vector<6x128xf32>, vector<2x128xf32> -> vector<2x128xf32>
    %6 = arith.addf %2, %5 : vector<2x128xf32>
    %c0_8 = arith.constant 0 : index
    %c0_9 = arith.constant 0 : index
    %7 = vector.load %arg8[%c0_8, %c0_9] : memref<1x128xf32, #tpu.memory_space<vmem>>, vector<1x128xf32>
    %8 = vector.broadcast %7 : vector<1x128xf32> to vector<2x128xf32>
    %9 = arith.addf %6, %8 : vector<2x128xf32>
    %c0_10 = arith.constant 0 : index
    %c0_11 = arith.constant 0 : index
    %10 = vector.load %arg2[%c0_10, %c0_11] : memref<2x32xf32, #tpu.memory_space<vmem>>, vector<2x32xf32>
    %c0_12 = arith.constant 0 : index
    %c0_13 = arith.constant 0 : index
    %11 = vector.load %arg3[%c0_12, %c0_13] : memref<2x32xf32, #tpu.memory_space<vmem>>, vector<2x32xf32>
    %cst_14 = arith.constant 0.000000e+00 : f32
    %12 = vector.broadcast %cst_14 : f32 to vector<2x2xf32>
    %c0_15 = arith.constant 0 : index
    %c0_16 = arith.constant 0 : index
    %13 = vector.load %arg4[%c0_15, %c0_16] : memref<2x128xf32, #tpu.memory_space<vmem>>, vector<2x128xf32>
    %cst_17 = arith.constant dense<0.000000e+00> : vector<2x128xf32>
    %14 = tpu.matmul %12, %13, %cst_17 {dimension_numbers = #tpu.dot_dimension_numbers<[1], [0], [0], [1], [0, 0, 1, 1], [], []>} : vector<2x2xf32>, vector<2x128xf32>, vector<2x128xf32> -> vector<2x128xf32>
    %15 = arith.addf %9, %14 : vector<2x128xf32>
    %c0_18 = arith.constant 0 : index
    %c0_19 = arith.constant 0 : index
    %16 = vector.load %arg7[%c0_18, %c0_19] : memref<32x128xf32, #tpu.memory_space<vmem>>, vector<32x128xf32>
    %cst_20 = arith.constant dense<0.000000e+00> : vector<2x128xf32>
    %17 = tpu.matmul %10, %16, %cst_20 {dimension_numbers = #tpu.dot_dimension_numbers<[1], [0], [0], [1], [0, 0, 1, 1], [], []>} : vector<2x32xf32>, vector<32x128xf32>, vector<2x128xf32> -> vector<2x128xf32>
    %18 = arith.addf %15, %17 : vector<2x128xf32>
    %19 = vector.extract_strided_slice %18 {offsets = [0, 0], sizes = [2, 32], strides = [1, 1]} : vector<2x128xf32> to vector<2x32xf32>
    %20 = arith.negf %19 : vector<2x32xf32>
    %21 = math.exp %20 : vector<2x32xf32>
    %cst_21 = arith.constant 1.000000e+00 : f32
    %22 = vector.broadcast %cst_21 : f32 to vector<2x32xf32>
    %23 = arith.addf %22, %21 : vector<2x32xf32>
    %24 = arith.divf %22, %23 : vector<2x32xf32>
    %25 = vector.extract_strided_slice %18 {offsets = [0, 32], sizes = [2, 32], strides = [1, 1]} : vector<2x128xf32> to vector<2x32xf32>
    %26 = arith.negf %25 : vector<2x32xf32>
    %27 = math.exp %26 : vector<2x32xf32>
    %cst_22 = arith.constant 1.000000e+00 : f32
    %28 = vector.broadcast %cst_22 : f32 to vector<2x32xf32>
    %29 = arith.addf %28, %27 : vector<2x32xf32>
    %30 = arith.divf %28, %29 : vector<2x32xf32>
    %31 = vector.extract_strided_slice %18 {offsets = [0, 64], sizes = [2, 32], strides = [1, 1]} : vector<2x128xf32> to vector<2x32xf32>
    %32 = math.tanh %31 : vector<2x32xf32>
    %33 = vector.extract_strided_slice %18 {offsets = [0, 96], sizes = [2, 32], strides = [1, 1]} : vector<2x128xf32> to vector<2x32xf32>
    %34 = arith.negf %33 : vector<2x32xf32>
    %35 = math.exp %34 : vector<2x32xf32>
    %cst_23 = arith.constant 1.000000e+00 : f32
    %36 = vector.broadcast %cst_23 : f32 to vector<2x32xf32>
    %37 = arith.addf %36, %35 : vector<2x32xf32>
    %38 = arith.divf %36, %37 : vector<2x32xf32>
    %39 = arith.mulf %30, %11 : vector<2x32xf32>
    %40 = arith.mulf %24, %32 : vector<2x32xf32>
    %41 = arith.addf %39, %40 : vector<2x32xf32>
    %42 = math.tanh %41 : vector<2x32xf32>
    %43 = arith.mulf %38, %42 : vector<2x32xf32>
    %c0_24 = arith.constant 0 : index
    %c0_25 = arith.constant 0 : index
    %44 = vector.load %arg9[%c0_24, %c0_25] : memref<32x2xf32, #tpu.memory_space<vmem>>, vector<32x2xf32>
    %cst_26 = arith.constant dense<0.000000e+00> : vector<2x2xf32>
    %45 = tpu.matmul %43, %44, %cst_26 {dimension_numbers = #tpu.dot_dimension_numbers<[1], [0], [0], [1], [0, 0, 1, 1], [], []>} : vector<2x32xf32>, vector<32x2xf32>, vector<2x2xf32> -> vector<2x2xf32>
    %c0_27 = arith.constant 0 : index
    %c0_28 = arith.constant 0 : index
    %46 = vector.load %arg10[%c0_27, %c0_28] : memref<1x2xf32, #tpu.memory_space<vmem>>, vector<1x2xf32>
    %47 = vector.broadcast %46 : vector<1x2xf32> to vector<2x2xf32>
    %48 = arith.addf %45, %47 : vector<2x2xf32>
    %c0_29 = arith.constant 0 : index
    %c0_30 = arith.constant 0 : index
    %49 = vector.load %arg11[%c0_29, %c0_30] : memref<2x8xf32, #tpu.memory_space<vmem>>, vector<2x2xf32>
    tpu.vector_store %arg11[%c0_29, %c0_30], %48 {strides = array<i32>} : memref<2x8xf32, #tpu.memory_space<vmem>>, vector<2x2xf32>,
    %c0_31 = arith.constant 0 : index
    %c0_32 = arith.constant 0 : index
    %50 = vector.load %arg4[%c0_31, %c0_32] : memref<2x128xf32, #tpu.memory_space<vmem>>, vector<2x128xf32>
    %cst_33 = arith.constant dense<0.000000e+00> : vector<2x128xf32>
    %51 = tpu.matmul %48, %50, %cst_33 {dimension_numbers = #tpu.dot_dimension_numbers<[1], [0], [0], [1], [0, 0, 1, 1], [], []>} : vector<2x2xf32>, vector<2x128xf32>, vector<2x128xf32> -> vector<2x128xf32>
    %52 = arith.addf %9, %51 : vector<2x128xf32>
    %c0_34 = arith.constant 0 : index
    %c0_35 = arith.constant 0 : index
    %53 = vector.load %arg7[%c0_34, %c0_35] : memref<32x128xf32, #tpu.memory_space<vmem>>, vector<32x128xf32>
    %cst_36 = arith.constant dense<0.000000e+00> : vector<2x128xf32>
    %54 = tpu.matmul %43, %53, %cst_36 {dimension_numbers = #tpu.dot_dimension_numbers<[1], [0], [0], [1], [0, 0, 1, 1], [], []>} : vector<2x32xf32>, vector<32x128xf32>, vector<2x128xf32> -> vector<2x128xf32>
    %55 = arith.addf %52, %54 : vector<2x128xf32>
    %56 = vector.extract_strided_slice %55 {offsets = [0, 0], sizes = [2, 32], strides = [1, 1]} : vector<2x128xf32> to vector<2x32xf32>
    %57 = arith.negf %56 : vector<2x32xf32>
    %58 = math.exp %57 : vector<2x32xf32>
    %cst_37 = arith.constant 1.000000e+00 : f32
    %59 = vector.broadcast %cst_37 : f32 to vector<2x32xf32>
    %60 = arith.addf %59, %58 : vector<2x32xf32>
    %61 = arith.divf %59, %60 : vector<2x32xf32>
    %62 = vector.extract_strided_slice %55 {offsets = [0, 32], sizes = [2, 32], strides = [1, 1]} : vector<2x128xf32> to vector<2x32xf32>
    %63 = arith.negf %62 : vector<2x32xf32>
    %64 = math.exp %63 : vector<2x32xf32>
    %cst_38 = arith.constant 1.000000e+00 : f32
    %65 = vector.broadcast %cst_38 : f32 to vector<2x32xf32>
    %66 = arith.addf %65, %64 : vector<2x32xf32>
    %67 = arith.divf %65, %66 : vector<2x32xf32>
    %68 = vector.extract_strided_slice %55 {offsets = [0, 64], sizes = [2, 32], strides = [1, 1]} : vector<2x128xf32> to vector<2x32xf32>
    %69 = math.tanh %68 : vector<2x32xf32>
    %70 = vector.extract_strided_slice %55 {offsets = [0, 96], sizes = [2, 32], strides = [1, 1]} : vector<2x128xf32> to vector<2x32xf32>
    %71 = arith.negf %70 : vector<2x32xf32>
    %72 = math.exp %71 : vector<2x32xf32>
    %cst_39 = arith.constant 1.000000e+00 : f32
    %73 = vector.broadcast %cst_39 : f32 to vector<2x32xf32>
    %74 = arith.addf %73, %72 : vector<2x32xf32>
    %75 = arith.divf %73, %74 : vector<2x32xf32>
    %76 = arith.mulf %67, %41 : vector<2x32xf32>
    %77 = arith.mulf %61, %69 : vector<2x32xf32>
    %78 = arith.addf %76, %77 : vector<2x32xf32>
    %79 = math.tanh %78 : vector<2x32xf32>
    %80 = arith.mulf %75, %79 : vector<2x32xf32>
    %c0_40 = arith.constant 0 : index
    %c0_41 = arith.constant 0 : index
    %81 = vector.load %arg9[%c0_40, %c0_41] : memref<32x2xf32, #tpu.memory_space<vmem>>, vector<32x2xf32>
    %cst_42 = arith.constant dense<0.000000e+00> : vector<2x2xf32>
    %82 = tpu.matmul %80, %81, %cst_42 {dimension_numbers = #tpu.dot_dimension_numbers<[1], [0], [0], [1], [0, 0, 1, 1], [], []>} : vector<2x32xf32>, vector<32x2xf32>, vector<2x2xf32> -> vector<2x2xf32>
    %c0_43 = arith.constant 0 : index
    %c0_44 = arith.constant 0 : index
    %83 = vector.load %arg10[%c0_43, %c0_44] : memref<1x2xf32, #tpu.memory_space<vmem>>, vector<1x2xf32>
    %84 = vector.broadcast %83 : vector<1x2xf32> to vector<2x2xf32>
    %85 = arith.addf %82, %84 : vector<2x2xf32>
    %c0_45 = arith.constant 0 : index
    %c2 = arith.constant 2 : index
    %86 = vector.load %arg11[%c0_45, %c2] : memref<2x8xf32, #tpu.memory_space<vmem>>, vector<2x2xf32>
    tpu.vector_store %arg11[%c0_45, %c2], %85 {strides = array<i32>} : memref<2x8xf32, #tpu.memory_space<vmem>>, vector<2x2xf32>,
    %c0_46 = arith.constant 0 : index
    %c0_47 = arith.constant 0 : index
    %87 = vector.load %arg4[%c0_46, %c0_47] : memref<2x128xf32, #tpu.memory_space<vmem>>, vector<2x128xf32>
    %cst_48 = arith.constant dense<0.000000e+00> : vector<2x128xf32>
    %88 = tpu.matmul %85, %87, %cst_48 {dimension_numbers = #tpu.dot_dimension_numbers<[1], [0], [0], [1], [0, 0, 1, 1], [], []>} : vector<2x2xf32>, vector<2x128xf32>, vector<2x128xf32> -> vector<2x128xf32>
    %89 = arith.addf %9, %88 : vector<2x128xf32>
    %c0_49 = arith.constant 0 : index
    %c0_50 = arith.constant 0 : index
    %90 = vector.load %arg7[%c0_49, %c0_50] : memref<32x128xf32, #tpu.memory_space<vmem>>, vector<32x128xf32>
    %cst_51 = arith.constant dense<0.000000e+00> : vector<2x128xf32>
    %91 = tpu.matmul %80, %90, %cst_51 {dimension_numbers = #tpu.dot_dimension_numbers<[1], [0], [0], [1], [0, 0, 1, 1], [], []>} : vector<2x32xf32>, vector<32x128xf32>, vector<2x128xf32> -> vector<2x128xf32>
    %92 = arith.addf %89, %91 : vector<2x128xf32>
    %93 = vector.extract_strided_slice %92 {offsets = [0, 0], sizes = [2, 32], strides = [1, 1]} : vector<2x128xf32> to vector<2x32xf32>
    %94 = arith.negf %93 : vector<2x32xf32>
    %95 = math.exp %94 : vector<2x32xf32>
    %cst_52 = arith.constant 1.000000e+00 : f32
    %96 = vector.broadcast %cst_52 : f32 to vector<2x32xf32>
    %97 = arith.addf %96, %95 : vector<2x32xf32>
    %98 = arith.divf %96, %97 : vector<2x32xf32>
    %99 = vector.extract_strided_slice %92 {offsets = [0, 32], sizes = [2, 32], strides = [1, 1]} : vector<2x128xf32> to vector<2x32xf32>
    %100 = arith.negf %99 : vector<2x32xf32>
    %101 = math.exp %100 : vector<2x32xf32>
    %cst_53 = arith.constant 1.000000e+00 : f32
    %102 = vector.broadcast %cst_53 : f32 to vector<2x32xf32>
    %103 = arith.addf %102, %101 : vector<2x32xf32>
    %104 = arith.divf %102, %103 : vector<2x32xf32>
    %105 = vector.extract_strided_slice %92 {offsets = [0, 64], sizes = [2, 32], strides = [1, 1]} : vector<2x128xf32> to vector<2x32xf32>
    %106 = math.tanh %105 : vector<2x32xf32>
    %107 = vector.extract_strided_slice %92 {offsets = [0, 96], sizes = [2, 32], strides = [1, 1]} : vector<2x128xf32> to vector<2x32xf32>
    %108 = arith.negf %107 : vector<2x32xf32>
    %109 = math.exp %108 : vector<2x32xf32>
    %cst_54 = arith.constant 1.000000e+00 : f32
    %110 = vector.broadcast %cst_54 : f32 to vector<2x32xf32>
    %111 = arith.addf %110, %109 : vector<2x32xf32>
    %112 = arith.divf %110, %111 : vector<2x32xf32>
    %113 = arith.mulf %104, %78 : vector<2x32xf32>
    %114 = arith.mulf %98, %106 : vector<2x32xf32>
    %115 = arith.addf %113, %114 : vector<2x32xf32>
    %116 = math.tanh %115 : vector<2x32xf32>
    %117 = arith.mulf %112, %116 : vector<2x32xf32>
    %c0_55 = arith.constant 0 : index
    %c0_56 = arith.constant 0 : index
    %118 = vector.load %arg9[%c0_55, %c0_56] : memref<32x2xf32, #tpu.memory_space<vmem>>, vector<32x2xf32>
    %cst_57 = arith.constant dense<0.000000e+00> : vector<2x2xf32>
    %119 = tpu.matmul %117, %118, %cst_57 {dimension_numbers = #tpu.dot_dimension_numbers<[1], [0], [0], [1], [0, 0, 1, 1], [], []>} : vector<2x32xf32>, vector<32x2xf32>, vector<2x2xf32> -> vector<2x2xf32>
    %c0_58 = arith.constant 0 : index
    %c0_59 = arith.constant 0 : index
    %120 = vector.load %arg10[%c0_58, %c0_59] : memref<1x2xf32, #tpu.memory_space<vmem>>, vector<1x2xf32>
    %121 = vector.broadcast %120 : vector<1x2xf32> to vector<2x2xf32>
    %122 = arith.addf %119, %121 : vector<2x2xf32>
    %c0_60 = arith.constant 0 : index
    %c4 = arith.constant 4 : index
    %123 = vector.load %arg11[%c0_60, %c4] : memref<2x8xf32, #tpu.memory_space<vmem>>, vector<2x2xf32>
    tpu.vector_store %arg11[%c0_60, %c4], %122 {strides = array<i32>} : memref<2x8xf32, #tpu.memory_space<vmem>>, vector<2x2xf32>,
    %c0_61 = arith.constant 0 : index
    %c0_62 = arith.constant 0 : index
    %124 = vector.load %arg4[%c0_61, %c0_62] : memref<2x128xf32, #tpu.memory_space<vmem>>, vector<2x128xf32>
    %cst_63 = arith.constant dense<0.000000e+00> : vector<2x128xf32>
    %125 = tpu.matmul %122, %124, %cst_63 {dimension_numbers = #tpu.dot_dimension_numbers<[1], [0], [0], [1], [0, 0, 1, 1], [], []>} : vector<2x2xf32>, vector<2x128xf32>, vector<2x128xf32> -> vector<2x128xf32>
    %126 = arith.addf %9, %125 : vector<2x128xf32>
    %c0_64 = arith.constant 0 : index
    %c0_65 = arith.constant 0 : index
    %127 = vector.load %arg7[%c0_64, %c0_65] : memref<32x128xf32, #tpu.memory_space<vmem>>, vector<32x128xf32>
    %cst_66 = arith.constant dense<0.000000e+00> : vector<2x128xf32>
    %128 = tpu.matmul %117, %127, %cst_66 {dimension_numbers = #tpu.dot_dimension_numbers<[1], [0], [0], [1], [0, 0, 1, 1], [], []>} : vector<2x32xf32>, vector<32x128xf32>, vector<2x128xf32> -> vector<2x128xf32>
    %129 = arith.addf %126, %128 : vector<2x128xf32>
    %130 = vector.extract_strided_slice %129 {offsets = [0, 0], sizes = [2, 32], strides = [1, 1]} : vector<2x128xf32> to vector<2x32xf32>
    %131 = arith.negf %130 : vector<2x32xf32>
    %132 = math.exp %131 : vector<2x32xf32>
    %cst_67 = arith.constant 1.000000e+00 : f32
    %133 = vector.broadcast %cst_67 : f32 to vector<2x32xf32>
    %134 = arith.addf %133, %132 : vector<2x32xf32>
    %135 = arith.divf %133, %134 : vector<2x32xf32>
    %136 = vector.extract_strided_slice %129 {offsets = [0, 32], sizes = [2, 32], strides = [1, 1]} : vector<2x128xf32> to vector<2x32xf32>
    %137 = arith.negf %136 : vector<2x32xf32>
    %138 = math.exp %137 : vector<2x32xf32>
    %cst_68 = arith.constant 1.000000e+00 : f32
    %139 = vector.broadcast %cst_68 : f32 to vector<2x32xf32>
    %140 = arith.addf %139, %138 : vector<2x32xf32>
    %141 = arith.divf %139, %140 : vector<2x32xf32>
    %142 = vector.extract_strided_slice %129 {offsets = [0, 64], sizes = [2, 32], strides = [1, 1]} : vector<2x128xf32> to vector<2x32xf32>
    %143 = math.tanh %142 : vector<2x32xf32>
    %144 = vector.extract_strided_slice %129 {offsets = [0, 96], sizes = [2, 32], strides = [1, 1]} : vector<2x128xf32> to vector<2x32xf32>
    %145 = arith.negf %144 : vector<2x32xf32>
    %146 = math.exp %145 : vector<2x32xf32>
    %cst_69 = arith.constant 1.000000e+00 : f32
    %147 = vector.broadcast %cst_69 : f32 to vector<2x32xf32>
    %148 = arith.addf %147, %146 : vector<2x32xf32>
    %149 = arith.divf %147, %148 : vector<2x32xf32>
    %150 = arith.mulf %141, %115 : vector<2x32xf32>
    %151 = arith.mulf %135, %143 : vector<2x32xf32>
    %152 = arith.addf %150, %151 : vector<2x32xf32>
    %153 = math.tanh %152 : vector<2x32xf32>
    %154 = arith.mulf %149, %153 : vector<2x32xf32>
    %c0_70 = arith.constant 0 : index
    %c0_71 = arith.constant 0 : index
    %155 = vector.load %arg9[%c0_70, %c0_71] : memref<32x2xf32, #tpu.memory_space<vmem>>, vector<32x2xf32>
    %cst_72 = arith.constant dense<0.000000e+00> : vector<2x2xf32>
    %156 = tpu.matmul %154, %155, %cst_72 {dimension_numbers = #tpu.dot_dimension_numbers<[1], [0], [0], [1], [0, 0, 1, 1], [], []>} : vector<2x32xf32>, vector<32x2xf32>, vector<2x2xf32> -> vector<2x2xf32>
    %c0_73 = arith.constant 0 : index
    %c0_74 = arith.constant 0 : index
    %157 = vector.load %arg10[%c0_73, %c0_74] : memref<1x2xf32, #tpu.memory_space<vmem>>, vector<1x2xf32>
    %158 = vector.broadcast %157 : vector<1x2xf32> to vector<2x2xf32>
    %159 = arith.addf %156, %158 : vector<2x2xf32>
    %c0_75 = arith.constant 0 : index
    %c6 = arith.constant 6 : index
    %160 = vector.load %arg11[%c0_75, %c6] : memref<2x8xf32, #tpu.memory_space<vmem>>, vector<2x2xf32>
    tpu.vector_store %arg11[%c0_75, %c6], %159 {strides = array<i32>} : memref<2x8xf32, #tpu.memory_space<vmem>>, vector<2x2xf32>,
    return
  }
}

</mosaic_0001>

<bundles_post_ra>
// kernel: tpu_custom_call.1
= control target key start
LH: loop header
LB: loop body
LE: loop exit
PB: predicated region body
PF: predicated region fallthrough
CT: control target
= control target key end

     0   :  { %vm47_vm0 = vcmask 1045504   ;;  %vm43_vm1 = vcmask 48128   ;;  %v1621_v1 = vmov 0.0   ;;  %vm1622_vm2 = vmmov 0   ;;  %s1885_s0 = inlined_call_operand.vmem [shape: f32[2,8], index: 0, kind: input, shape index: {}]   ;;  %s1886_s1 = inlined_call_operand.vmem [shape: f32[2,6], index: 1, kind: input, shape index: {}]   ;;  %s1887_s2 = inlined_call_operand.vmem [shape: f32[2,32], index: 2, kind: input, shape index: {}]   ;;  %s1888_s3 = inlined_call_operand.vmem [shape: f32[2,32], index: 3, kind: input, shape index: {}]   ;;  %s1889_s4 = inlined_call_operand.vmem [shape: f32[2,128], index: 4, kind: input, shape index: {}]   ;;  %s1890_s5 = inlined_call_operand.vmem [shape: f32[8,128], index: 5, kind: input, shape index: {}]   ;;  %s1891_s6 = inlined_call_operand.vmem [shape: f32[6,128], index: 6, kind: input, shape index: {}]   ;;  %s1892_s7 = inlined_call_operand.vmem [shape: f32[32,128], index: 7, kind: input, shape index: {}]   ;;  %s1893_s8 = inlined_call_operand.vmem [shape: f32[1,128], index: 8, kind: input, shape index: {}]   ;;  %s1894_s9 = inlined_call_operand.vmem [shape: f32[32,2], index: 9, kind: input, shape index: {}]   ;;  %s1895_s10 = inlined_call_operand.vmem [shape: f32[1,2], index: 10, kind: input, shape index: {}]   ;;  %s1896_s11 = inlined_call_operand.hbm [shape: f32[2,8], index: 11, kind: output, shape index: {}]  }
   0x1   :  { %v42_v0 = vld [vmem:[%s1891_s6] sm:$0x3f]  ;;  %1378 = vmatprep.subr.mxu0 %v1621_v1  ;;  %1380 = vmatprep.mubr.msk.f32.mxu0 %vm1622_vm2, %v1621_v1  ;;  %vm121_vm3 = vcmask 64512   ;;  %vm210_vm4 = vcmask 1041408   ;;  %v286_v7 = vld [vmem:[%s1892_s7 + $0x8] sm:$0xff] }
   0x2   :  { %v41_v2 = vld [vmem:[%s1886_s1] sm:$0x3]  ;;  %1379 = vmatpush3.msk.msra.mxu0 %vm47_vm0, %v42_v0  ;;  %1383 = vmatprep.subr.mxu1 %v1621_v1 }
   0x3   :  { %v40_v3 = vld [vmem:[%s1890_s5] sm:$0xff]  ;;  %1381 = vmatmul.mubr.msk.f32.vlgmr.msra.gmra.mrb[0].mxu0 %vm43_vm1, %v41_v2  ;;  %1385 = vmatprep.mubr.msk.f32.mxu1 %vm1622_vm2, %v1621_v1 }
   0x4   :  { %v39_v4 = vld [vmem:[%s1885_s0] sm:$0x3]  ;;  %1384 = vmatpush3.msra.mxu1 %v40_v3  ;;  %1388 = vmatprep.subr.mxu0 %v1621_v1 }
   0x5   :  { %v205_v5 = vld [vmem:[%s1889_s4] sm:$0x3] }
   0x6   :  { %v285_v6 = vld [vmem:[%s1892_s7] sm:$0xff] }
   0x7   :  { %v1718_v8 = vpack.c.bf16 %v286_v7, %v285_v6 }
   0x8   :  { %16 = vsyncpa [#allocation3], 0  ;;  %1386 = vmatmul.mubr.msk.f32.vlgmr.msra.gmra.mrb[0].mxu1 %vm121_vm3, %v39_v4  ;;  %1389 = vmatpush3.msk.msra.mxu0 %vm210_vm4, %v205_v5  ;;  %v287_v9 = vld [vmem:[%s1892_s7 + $0x10] sm:$0xff]  ;;  %v288_v10 = vld [vmem:[%s1892_s7 + $0x18] sm:$0xff]  ;;  %v1623_v11 = vmov 0.0|0.0   ;;  %vm289_vm5 = vcmask 261120  }
   0x9   :  { %1390 = vmatprep.mubr.msk.f32.mxu0 %vm1622_vm2, %v1621_v1  ;;  %1496 = vmatprep.subr.bf16.mxu0 %v1623_v11  ;;  %v1733_v12 = vpack.c.bf16 %v288_v10, %v287_v9  ;;  %v203_v13 = vld [vmem:[%s1887_s2] sm:$0x3]  ;;  %s1624_s2 = smov 64   ;;  %s1625_s17 = smov 32   ;;  %v393_v37 = vld [vmem:[%s1894_s9 + $0x8] sm:$0xff]  ;;  %v394_v38 = vld [vmem:[%s1894_s9 + $0x10] sm:$0xff] }
   0xa   :  { %1391 = vmatmul.mubr.f32.vlgmr.msra.gmra.mrb[2].mxu0 %v1621_v1  ;;  %1502 = vmatprep.subr.bf16.mxu1 %v1623_v11  ;;  %v1302_v19 = vld [vmem:[%s1893_s8] ss:$0 sm:$0xff]  ;;  %v395_v40 = vld [vmem:[%s1894_s9 + $0x18] sm:$0xff]  ;;  %vm478_vm6 = vcmask 9216   ;;  %vm206_vm7 = vcmask 15360   ;;  %vm747_vm8 = vcmask 25616  }
   0xb   :  { %1498 = vmatpush3.bf16.msra.mxu0 %v1718_v8  ;;  %1401 = vmatprep.mubr.msk.f32.mxu0 %vm1622_vm2, %v1621_v1  ;;  %v204_v25 = vld [vmem:[%s1888_s3] sm:$0x3]  ;;  %v1775_v41 = vpack.c.bf16 %v395_v40, %v394_v38  ;;  %s1627_s28 = smov 4   ;;  %vm1015_vm9 = vcmask 42016   ;;  %s1628_s0 = smov 6   ;;  %vm1283_vm10 = vcmask 58416  }
   0xc   :  { %1499 = vmatprep.subr.bf16.mxu0 %v1623_v11  ;;  %1412 = vmatprep.mubr.msk.f32.mxu1 %vm1622_vm2, %v1621_v1  ;;  %v392_v36 = vld [vmem:[%s1894_s9] sm:$0xff]  ;;  %s1629_s5 = smov [#allocation2]  }
   0xd   :  { %v1769_v39 = vpack.c.bf16 %v393_v37, %v392_v36  ;;  %v480_v46 = vld [vmem:[%s1889_s4] sm:$0x3]  ;;  %s1291_s29 = sshll.u32 %s1629_s5, 4  ;;  %s1292_s29 = int_to_ptr.vmem [resolvable:$true] %s1291_s29 }
   0xe   :  { %v1797_v47 = vld [vmem:[%s1895_s10] ss:$0 sm:$0xff]  ;;  %s1597_s30 = scalar_lea.vmem %s1292_s29, 32  ;;  %p1602_p1 = scmp.lt.s32.totalorder %s1292_s29, %s1292_s29 }
   0xf   :  { %1501 = vmatpush3.bf16.msra.mxu0 %v1733_v12  ;;  %1504 = vmatpush3.bf16.msra.mxu1 %v1769_v39  ;;  %v749_v5 = vld [vmem:[%s1889_s4] sm:$0x3]  ;;  %p1598_p0 = scmp.ne.s32.totalorder %s1292_s29, %s1597_s30  ;;  %p1603_p2 = scmp.lt.s32.totalorder %s1597_s30, %s1597_s30 }
  0x10   :  { %1514 = vmatprep.subr.bf16.mxu0 %v1623_v11  ;;  %1505 = vmatprep.subr.bf16.mxu1 %v1623_v11 }
  0x11   :  { %p1604_p3 = por %p1603_p2, %p1602_p1 }
  0x12   :  { %1402 = vmatmul.mubr.msk.f32.vlgmr.msra.gmra.mrb[2].mxu0 %vm289_vm5, %v203_v13 }
  0x13   :  { %1439 = vmatprep.mubr.msk.f32.mxu0 %vm1622_vm2, %v1621_v1  ;;  %1516 = vmatpush3.bf16.msra.mxu0 %v1769_v39  ;;  %p1605_p4 = pnand %p1604_p3, %p1598_p0 }
  0x14   :  { %1517 = vmatprep.subr.bf16.mxu0 %v1623_v11  ;;  %1507 = vmatpush3.bf16.msra.mxu1 %v1775_v41 }
  0x15   :  { %1415 = vmatprep.subr.mxu1 %v1621_v1 }
  0x17   :  { %1519 = vmatpush3.bf16.msra.mxu0 %v1775_v41 }
  0x18   :  { %1442 = vmatprep.subr.mxu0 %v1621_v1 }
  0xd6   :  { %v117_v14 = vpop.f32.mrb[0].mxu0 }
  0xd7   :  { %v1382_v15 = vpop.f32.mrb[1].mxu0 }
  0xdb   :  { %v191_v16 = vpop.f32.mrb[0].mxu1 }
  0xdc   :  { %v192_v17 = vadd.f32 %v191_v16, %v117_v14  ;;  %v1387_v18 = vpop.f32.mrb[1].mxu1 }
  0xde   :  { %v1751_v20 = vadd.f32 %v1302_v19, %v192_v17 }
  0xe5   :  { %v359_v21 = vpop.f32.mrb[2].mxu0 }
  0xe6   :  { %v1544_v22 = vadd.f32 %v359_v21, %v1751_v20  ;;  %v1403_v23 = vpop.f32.mrb[3].mxu0 }
  0xe8   :  { %1565 = vtanh.f32 %v1544_v22  ;;  %v1305_v26 = vmul.f32 -1.442695, %v1544_v22 }
  0xea   :  { %1567 = vpow2.f32 %v1305_v26 }
  0xf2   :  { %v1566_v24 = vpop.eup %1565 }
  0xf3   :  { %377 = vrot.lane.b32.xlu0 %v1566_v24, %s1624_s2 }
  0xf4   :  { %v1568_v27 = vpop.eup %1567 }
  0xf5   :  { %v367_v28 = vadd.f32 1.0, %v1568_v27 }
  0xf7   :  { %372 = vrot.lane.b32.xlu0 %v204_v25, %s1625_s17  ;;  %1569 = vrcp.f32 %v367_v28 }
 0x101   :  { %v1570_v29 = vpop.eup %1569 }
 0x165   :  { %v378_v30 = vpop.permute.xlu0 %377 }
 0x166   :  { %v380_v31 = vmul.f32 %v1570_v29, %v378_v30  ;;  %v1017_v30 = vld [vmem:[%s1889_s4] sm:$0x3]  ;;  %s1626_s4 = smov 2  }
 0x168   :  { %382 = vrot.lane.b32.xlu1 %v380_v31, %s1625_s17 }
 0x169   :  { %v373_v32 = vpop.permute.xlu0 %372 }
 0x16a   :  { %v375_v33 = vmul.f32 %v1570_v29, %v373_v32 }
 0x1da   :  { %v383_v34 = vpop.permute.xlu1 %382 }
 0x1db   :  { %v385_v35 = vadd.f32 %v383_v34, %v375_v33 }
 0x1dd   :  { %1571 = vtanh.f32 %v385_v35 }
 0x1e7   :  { %v1572_v42 = vpop.eup %1571 }
 0x1e8   :  { %388 = vrot.lane.b32.xlu1 %v1572_v42, %s1624_s2 }
 0x25a   :  { %v389_v43 = vpop.permute.xlu1 %388 }
 0x25b   :  { %v391_v44 = vmul.f32 %v1570_v29, %v389_v43 }
 0x25d   :  { %404 = vrot.lane.b32.xlu0 %v391_v44, %s1625_s17 }
 0x2cf   :  { %v405_v45 = vpop.permute.xlu0 %404 }
 0x2d0   :  { %1413 = vmatmul.mubr.msk.f32.vlgmr.msra.gmra.mrb[2].mxu1 %vm289_vm5, %v405_v45 }
 0x2d1   :  { %1417 = vmatprep.mubr.msk.f32.mxu1 %vm1622_vm2, %v1621_v1  ;;  %1416 = vmatpush3.msk.msra.mxu1 %vm210_vm4, %v480_v46 }
 0x2d2   :  { %1508 = vmatprep.subr.bf16.mxu1 %v1623_v11 }
 0x3a3   :  { %v474_v48 = vpop.f32.mrb[2].mxu1 }
 0x3a4   :  { %v475_v49 = vadd.f32 %v1797_v47, %v474_v48  ;;  %v1414_v50 = vpop.f32.mrb[3].mxu1 }
 0x3a6   :  { %479 = vst.msk [vmem:[#allocation2] sm:$0x3] %vm478_vm6, %v475_v49  ;;  %1418 = vmatmul.mubr.msk.f32.vlgmr.msra.gmra.mrb[4].mxu1 %vm206_vm7, %v475_v49 }
 0x3a7   :  { %1510 = vmatpush3.bf16.msra.mxu1 %v1718_v8  ;;  %1428 = vmatprep.mubr.msk.f32.mxu1 %vm1622_vm2, %v1621_v1 }
 0x3a8   :  { %1511 = vmatprep.subr.bf16.mxu1 %v1623_v11 }
 0x3ab   :  { %1513 = vmatpush3.bf16.msra.mxu1 %v1733_v12 }
 0x3ac   :  { %1526 = vmatprep.subr.bf16.mxu1 %v1623_v11 }
 0x3ae   :  { %1429 = vmatmul.mubr.msk.f32.vlgmr.msra.gmra.mrb[4].mxu1 %vm289_vm5, %v405_v45 }
 0x3af   :  { %1528 = vmatpush3.bf16.msra.mxu1 %v1769_v39  ;;  %1466 = vmatprep.mubr.msk.f32.mxu1 %vm1622_vm2, %v1621_v1 }
 0x3b0   :  { %1529 = vmatprep.subr.bf16.mxu1 %v1623_v11 }
 0x3b3   :  { %1531 = vmatpush3.bf16.msra.mxu1 %v1775_v41 }
 0x3b4   :  { %1469 = vmatprep.subr.mxu1 %v1621_v1 }
 0x481   :  { %v628_v51 = vpop.f32.mrb[4].mxu1 }
 0x482   :  { %v1545_v52 = vadd.f32 %v628_v51, %v1751_v20  ;;  %v1430_v53 = vpop.f32.mrb[5].mxu1 }
 0x484   :  { %1573 = vtanh.f32 %v1545_v52  ;;  %v1311_v55 = vmul.f32 -1.442695, %v1545_v52 }
 0x486   :  { %1575 = vpow2.f32 %v1311_v55 }
 0x48e   :  { %v1574_v54 = vpop.eup %1573 }
 0x48f   :  { %642 = vrot.lane.b32.xlu1 %v1574_v54, %s1624_s2 }
 0x490   :  { %v1576_v56 = vpop.eup %1575 }
 0x491   :  { %v636_v57 = vadd.f32 1.0, %v1576_v56 }
 0x493   :  { %1577 = vrcp.f32 %v636_v57 }
 0x49d   :  { %v1578_v58 = vpop.eup %1577 }
 0x49e   :  { %v640_v61 = vmul.f32 %v1578_v58, %v385_v35 }
 0x501   :  { %v643_v59 = vpop.permute.xlu1 %642 }
 0x502   :  { %v645_v60 = vmul.f32 %v1578_v58, %v643_v59 }
 0x504   :  { %647 = vrot.lane.b32.xlu0 %v645_v60, %s1625_s17 }
 0x576   :  { %v648_v62 = vpop.permute.xlu0 %647 }
 0x577   :  { %v650_v63 = vadd.f32 %v648_v62, %v640_v61 }
 0x579   :  { %1579 = vtanh.f32 %v650_v63 }
 0x583   :  { %v1580_v0 = vpop.eup %1579 }
 0x584   :  { %653 = vrot.lane.b32.xlu1 %v1580_v0, %s1624_s2 }
 0x5f6   :  { %v654_v2 = vpop.permute.xlu1 %653 }
 0x5f7   :  { %v656_v3 = vmul.f32 %v1578_v58, %v654_v2 }
 0x5f9   :  { %669 = vrot.lane.b32.xlu0 %v656_v3, %s1625_s17 }
 0x66b   :  { %v670_v4 = vpop.permute.xlu0 %669 }
 0x66c   :  { %1440 = vmatmul.mubr.msk.f32.vlgmr.msra.gmra.mrb[4].mxu0 %vm289_vm5, %v670_v4 }
 0x66d   :  { %1444 = vmatprep.mubr.msk.f32.mxu0 %vm1622_vm2, %v1621_v1  ;;  %1443 = vmatpush3.msk.msra.mxu0 %vm210_vm4, %v749_v5 }
 0x66e   :  { %1520 = vmatprep.subr.bf16.mxu0 %v1623_v11 }
 0x73f   :  { %v739_v6 = vpop.f32.mrb[4].mxu0 }
 0x740   :  { %v1828_v7 = vadd.f32 %v1797_v47, %v739_v6  ;;  %v1441_v9 = vpop.f32.mrb[5].mxu0 }
 0x742   :  { %1445 = vmatmul.mubr.msk.f32.vlgmr.msra.gmra.mrb[6].mxu0 %vm206_vm7, %v1828_v7 }
 0x743   :  { %1522 = vmatpush3.bf16.msra.mxu0 %v1718_v8  ;;  %1455 = vmatprep.mubr.msk.f32.mxu0 %vm1622_vm2, %v1621_v1 }
 0x744   :  { %1523 = vmatprep.subr.bf16.mxu0 %v1623_v11 }
 0x747   :  { %1525 = vmatpush3.bf16.msra.mxu0 %v1733_v12 }
 0x748   :  { %1538 = vmatprep.subr.bf16.mxu0 %v1623_v11 }
 0x74a   :  { %1456 = vmatmul.mubr.msk.f32.vlgmr.msra.gmra.mrb[6].mxu0 %vm289_vm5, %v670_v4 }
 0x74b   :  { %1540 = vmatpush3.bf16.msra.mxu0 %v1769_v39  ;;  %1493 = vmatprep.mubr.msk.f32.mxu0 %vm1622_vm2, %v1621_v1 }
 0x74c   :  { %1541 = vmatprep.subr.bf16.mxu0 %v1623_v11 }
 0x74f   :  { %1543 = vmatpush3.bf16.msra.mxu0 %v1775_v41 }
 0x81d   :  { %v896_v10 = vpop.f32.mrb[6].mxu0 }
 0x81e   :  { %v1546_v13 = vadd.f32 %v896_v10, %v1751_v20  ;;  %v1457_v14 = vpop.f32.mrb[7].mxu0 }
 0x820   :  { %1581 = vtanh.f32 %v1546_v13  ;;  %v1317_v16 = vmul.f32 -1.442695, %v1546_v13 }
 0x822   :  { %1583 = vpow2.f32 %v1317_v16 }
 0x82a   :  { %v1582_v15 = vpop.eup %1581 }
 0x82b   :  { %910 = vrot.lane.b32.xlu1 %v1582_v15, %s1624_s2 }
 0x82c   :  { %v1584_v17 = vpop.eup %1583 }
 0x82d   :  { %v904_v18 = vadd.f32 1.0, %v1584_v17 }
 0x82f   :  { %1585 = vrcp.f32 %v904_v18 }
 0x839   :  { %v1586_v19 = vpop.eup %1585 }
 0x83a   :  { %v908_v23 = vmul.f32 %v1586_v19, %v650_v63 }
 0x89d   :  { %v911_v21 = vpop.permute.xlu1 %910 }
 0x89e   :  { %v913_v22 = vmul.f32 %v1586_v19, %v911_v21 }
 0x8a0   :  { %915 = vrot.lane.b32.xlu0 %v913_v22, %s1625_s17 }
 0x912   :  { %v916_v24 = vpop.permute.xlu0 %915 }
 0x913   :  { %v918_v25 = vadd.f32 %v916_v24, %v908_v23 }
 0x915   :  { %1587 = vtanh.f32 %v918_v25 }
 0x91f   :  { %v1588_v26 = vpop.eup %1587 }
 0x920   :  { %921 = vrot.lane.b32.xlu1 %v1588_v26, %s1624_s2 }
 0x992   :  { %v922_v27 = vpop.permute.xlu1 %921 }
 0x993   :  { %v924_v28 = vmul.f32 %v1586_v19, %v922_v27 }
 0x995   :  { %937 = vrot.lane.b32.xlu0 %v924_v28, %s1625_s17 }
 0xa07   :  { %v938_v29 = vpop.permute.xlu0 %937 }
 0xa08   :  { %1467 = vmatmul.mubr.msk.f32.vlgmr.msra.gmra.mrb[6].mxu1 %vm289_vm5, %v938_v29 }
 0xa09   :  { %1471 = vmatprep.mubr.msk.f32.mxu1 %vm1622_vm2, %v1621_v1  ;;  %1470 = vmatpush3.msk.msra.mxu1 %vm210_vm4, %v1017_v30 }
 0xa0a   :  { %1532 = vmatprep.subr.bf16.mxu1 %v1623_v11 }
 0xadb   :  { %v1007_v31 = vpop.f32.mrb[6].mxu1 }
 0xadc   :  { %v1008_v32 = vadd.f32 %v1797_v47, %v1007_v31  ;;  %v1468_v33 = vpop.f32.mrb[7].mxu1 }
 0xade   :  { %1472 = vmatmul.mubr.msk.f32.vlgmr.msra.gmra.mrb[8].mxu1 %vm206_vm7, %v1008_v32 }
 0xadf   :  { %1534 = vmatpush3.bf16.msra.mxu1 %v1718_v8  ;;  %1482 = vmatprep.mubr.msk.f32.mxu1 %vm1622_vm2, %v1621_v1 }
 0xae0   :  { %1535 = vmatprep.subr.bf16.mxu1 %v1623_v11 }
 0xae3   :  { %1537 = vmatpush3.bf16.msra.mxu1 %v1733_v12 }
 0xae6   :  { %1483 = vmatmul.mubr.msk.f32.vlgmr.msra.gmra.mrb[8].mxu1 %vm289_vm5, %v938_v29 }
 0xbb9   :  { %v1164_v34 = vpop.f32.mrb[8].mxu1 }
 0xbba   :  { %v1547_v35 = vadd.f32 %v1164_v34, %v1751_v20  ;;  %v1484_v36 = vpop.f32.mrb[9].mxu1 }
 0xbbc   :  { %1589 = vtanh.f32 %v1547_v35  ;;  %v1323_v38 = vmul.f32 -1.442695, %v1547_v35 }
 0xbbe   :  { %1591 = vpow2.f32 %v1323_v38 }
 0xbc6   :  { %v1590_v37 = vpop.eup %1589 }
 0xbc7   :  { %1178 = vrot.lane.b32.xlu1 %v1590_v37, %s1624_s2 }
 0xbc8   :  { %v1592_v8 = vpop.eup %1591 }
 0xbc9   :  { %v1172_v39 = vadd.f32 1.0, %v1592_v8 }
 0xbcb   :  { %1593 = vrcp.f32 %v1172_v39 }
 0xbd5   :  { %v1594_v1 = vpop.eup %1593 }
 0xbd6   :  { %v1176_v12 = vmul.f32 %v1594_v1, %v918_v25 }
 0xc39   :  { %v1179_v40 = vpop.permute.xlu1 %1178 }
 0xc3a   :  { %v1181_v11 = vmul.f32 %v1594_v1, %v1179_v40 }
 0xc3c   :  { %1183 = vrot.lane.b32.xlu0 %v1181_v11, %s1625_s17 }
 0xcae   :  { %v1184_v41 = vpop.permute.xlu0 %1183 }
 0xcaf   :  { %v1186_v42 = vadd.f32 %v1184_v41, %v1176_v12 }
 0xcb1   :  { %1595 = vtanh.f32 %v1186_v42 }
 0xcbb   :  { %v1596_v20 = vpop.eup %1595 }
 0xcbc   :  { %1189 = vrot.lane.b32.xlu1 %v1596_v20, %s1624_s2 }
 0xcc0   :  { %744 = vrot.lane.b32.xlu1 %v1828_v7, %s1626_s4 }
 0xd2e   :  { %v1190_v43 = vpop.permute.xlu1 %1189 }
 0xd2f   :  { %v1192_v44 = vmul.f32 %v1594_v1, %v1190_v43 }
 0xd31   :  { %1205 = vrot.lane.b32.xlu0 %v1192_v44, %s1625_s17 }
 0xd32   :  { %v745_v45 = vpop.permute.xlu1 %744 }
 0xd33   :  { %748 = vst.msk [vmem:[#allocation2] sm:$0x3] %vm747_vm8, %v745_v45 }
 0xd35   :  { %1012 = vrot.lane.b32.xlu0 %v1008_v32, %s1627_s28 }
 0xda3   :  { %v1206_v46 = vpop.permute.xlu0 %1205 }
 0xda4   :  { %1494 = vmatmul.mubr.msk.f32.vlgmr.msra.gmra.mrb[8].mxu0 %vm289_vm5, %v1206_v46 }
 0xda7   :  { %v1013_v48 = vpop.permute.xlu0 %1012 }
 0xda8   :  { %1016 = vst.msk [vmem:[#allocation2] sm:$0x3] %vm1015_vm9, %v1013_v48 }
 0xe77   :  { %v1275_v49 = vpop.f32.mrb[8].mxu0 }
 0xe78   :  { %v1276_v50 = vadd.f32 %v1797_v47, %v1275_v49  ;;  %v1495_v51 = vpop.f32.mrb[9].mxu0 }
 0xe7a   :  { %1280 = vrot.lane.b32.xlu1 %v1276_v50, %s1628_s0 }
 0xeec   :  { %v1281_v52 = vpop.permute.xlu1 %1280 }
 0xeed   :  { %1284 = vst.msk [vmem:[#allocation2] sm:$0x3] %vm1283_vm10, %v1281_v52 }
 0xeee   :  { %1608 = shalt.err (!%p1605_p4)
}
 0xeef   :  { %s1609_s13 = scalar_lea.hbm %s1896_s11, 32 }
 0xef0   :  { %p1610_p5 = scmp.ne.s32.totalorder %s1896_s11, %s1609_s13  ;;  %p1613_p6 = scmp.lt.u32.totalorder %s1609_s13, %s1896_s11 }
 0xef2   :  { %p1615_p7 = pnand %p1613_p6, %p1610_p5 }
 0xef4   :  { %1618 = shalt.err (!%p1615_p7)
}
 0xef5   :  { %1294 = dma.vmem_to_hbm [thread:$0]  %s1292_s29, 32, %s1896_s11, [#allocation3]  }
 0xef6   :  { %1619 = dma.done.wait [#allocation3], 32  }
 0xef7   :  { %1620 = vsyncadd [#allocation3], 4294967264 }
 0xef8   :  { %1298 = vsyncpa [#allocation3], 1 }

</bundles_post_ra>
